<compile_context>
chip_gen: v5e
topology: v5e:2x2
jax: 0.10.0
libtpu: 0.0.40
codegen_flags: <defaults>
</compile_context>

<pallas_src>
import functools
import math

import jax
import jax.numpy as jnp
from jax.experimental import pallas as pl
from jax.experimental.pallas import tpu as pltpu


def _pe_kernel(step_ref, inv_ref, out_ref):
    """Write one block of the already-interleaved positional-encoding table.

    inv_ref : (tile_rows, W)  angles of grid block 0 (includes the pi/2 phase
                              on cos columns).
    step_ref: (1, W)          per-column angle increment per grid step
                              (tile_rows * fold * rate).
    out_ref : (tile_rows, W)  interleaved sin/cos table block.
    """
    g = pl.program_id(0).astype(jnp.float32)
    angle = inv_ref[...] + g * step_ref[...]          # (1,W) broadcasts over rows
    out_ref[...] = jnp.sin(angle).astype(out_ref.dtype)


@functools.lru_cache(maxsize=None)
def _build_pe_table(seq_len: int, d_model: int) -> jax.Array:
    """Compute the (1, seq_len, d_model) positional-encoding table once per shape."""
    assert d_model % 2 == 0, "d_model must be even (matches the PyTorch module)"

    # Fold enough consecutive positions into one row that the lane width is a
    # multiple of 128 -> all stores are full, unmasked.
    fold = 128 // math.gcd(d_model, 128)
    W = fold * d_model                                 # multiple of 128

    rows_needed = pl.cdiv(seq_len, fold)
    rows8 = max(8, ((rows_needed + 7) // 8) * 8)

    # ~4 MiB per output tile.
    budget_rows = max(8, ((4 << 20) // (W * 4)) // 8 * 8)
    n_steps = pl.cdiv(rows8, budget_rows)
    if rows8 >= 16:                                    # keep both v7x TCs busy
        n_steps = max(n_steps, 2)
        if n_steps % 2:
            n_steps += 1
    tile_rows = ((pl.cdiv(rows8, n_steps) + 7) // 8) * 8
    grid = pl.cdiv(rows8, tile_rows)
    padded_rows = grid * tile_rows                     # every block full

    # Positions must remain exactly representable integers in f32.
    assert padded_rows * fold < (1 << 24), "positional range exceeds exact f32 integers"

    # ---- grid-invariant constants, hoisted out of the kernel -----------------
    c = jnp.arange(W, dtype=jnp.int32)
    slot = c // d_model                                # folded position within row
    j = c % d_model                                    # feature index in d_model
    k2 = (j // 2) * 2                                  # 2k (matches arange(0, d, 2))
    parity = (j % 2).astype(jnp.float32)               # 0 -> sin col, 1 -> cos col
    rate = jnp.exp(k2.astype(jnp.float32) * jnp.float32(-math.log(10000.0) / d_model))
    phase = parity * jnp.float32(math.pi / 2.0)

    row = jnp.arange(tile_rows, dtype=jnp.int32)[:, None]
    pos0 = (row * fold + slot[None, :]).astype(jnp.float32)   # exact integers
    inv = pos0 * rate[None, :] + phase[None, :]               # (tile_rows, W)
    step = (jnp.float32(tile_rows * fold) * rate)[None, :]    # (1, W)

    out = pl.pallas_call(
        _pe_kernel,
        out_shape=jax.ShapeDtypeStruct((padded_rows, W), jnp.float32),
        grid_spec=pltpu.PrefetchScalarGridSpec(
            num_scalar_prefetch=0,
            grid=(grid,),
            in_specs=[
                pl.BlockSpec((1, W), lambda i: (0, 0)),           # step (resident)
                pl.BlockSpec((tile_rows, W), lambda i: (0, 0)),   # inv  (resident)
            ],
            out_specs=pl.BlockSpec((tile_rows, W), lambda i: (i, 0)),
        ),
        compiler_params=pltpu.CompilerParams(
            dimension_semantics=("parallel",),
        ),
        cost_estimate=pl.CostEstimate(
            flops=2 * padded_rows * W,
            transcendentals=padded_rows * W,
            bytes_accessed=padded_rows * W * 4 + (tile_rows + 1) * W * 4,
        ),
    )(step, inv)

    # Un-fold rows: free row-major reshape; the output is already interleaved.
    pe = out.reshape(padded_rows * fold, d_model)
    return pe[:seq_len][None]                          # (1, seq_len, d_model) f32


def positional_embedding(x: jax.Array, d_model: int, max_len: int = 5000) -> jax.Array:
    """Equivalent of PositionalEmbedding(d_model, max_len)(x) in PyTorch.

    x: (batch, seq_len, ...) -- only x.shape[1] (seq_len) is used.
    Returns float32 array of shape (1, seq_len, d_model).
    """
    seq_len = x.shape[1]
    assert seq_len <= max_len
    # Output stays float32 to match the PyTorch buffer.
    # TODO(synk): a bf16 variant (pack sin/cos pairs via pltpu.bitcast) would
    # halve writeback bytes on v6e/v7x if the consumer accepts bf16.
    return _build_pe_table(seq_len, d_model)


def _reference_pe(seq_len: int, d_model: int) -> jnp.ndarray:
    """Pure-JAX reference mirroring the PyTorch buffer construction."""
    position = jnp.arange(seq_len, dtype=jnp.float32)[:, None]
    div_term = jnp.exp(
        jnp.arange(0, d_model, 2, dtype=jnp.float32) * -(math.log(10000.0) / d_model)
    )
    pe = jnp.zeros((seq_len, d_model), jnp.float32)
    pe = pe.at[:, 0::2].set(jnp.sin(position * div_term))
    pe = pe.at[:, 1::2].set(jnp.cos(position * div_term))
    return pe[None]


if __name__ == "__main__":
    key = jax.random.PRNGKey(0)
    batch, seq_len, d_model = 2, 8, 32
    x = jax.random.normal(key, (batch, seq_len, d_model), dtype=jnp.float32)

    out = positional_embedding(x, d_model=d_model, max_len=5000)
    out = jax.block_until_ready(out)

    ref = _reference_pe(seq_len, d_model)
    assert out.shape == (1, seq_len, d_model), out.shape
    assert out.dtype == jnp.float32
    # atol 2e-5: the cos columns use sin(x + pi/2); the f32 rounding of the
    # shifted angle bounds the extra error at ~pos * eps (< 1e-5 here).
    assert jnp.allclose(out, ref, atol=2e-5, rtol=1e-5), float(jnp.max(jnp.abs(out - ref)))

    # Second call hits the per-shape memo (kernel runs once, like the torch buffer).
    out2 = jax.block_until_ready(positional_embedding(x, d_model=d_model))
    assert jnp.array_equal(out, out2)

    # Odd / non-divisible seq_len exercises the cdiv / padding / multi-block path.
    x_odd = jax.random.normal(key, (1, 37, d_model), dtype=jnp.float32)
    out_odd = jax.block_until_ready(positional_embedding(x_odd, d_model=d_model))
    assert jnp.allclose(out_odd, _reference_pe(37, d_model), atol=2e-5, rtol=1e-5), \
        float(jnp.max(jnp.abs(out_odd - _reference_pe(37, d_model))))

    print("KERNEL_OK")
</pallas_src>

<mosaic_0001>
module attributes {stable_mosaic.version = 11 : i64} {
  func.func @_pe_kernel(%arg0: i32, %arg1: memref<1x128xf32, #tpu.memory_space<vmem>>, %arg2: memref<8x128xf32, #tpu.memory_space<vmem>>, %arg3: memref<8x128xf32, #tpu.memory_space<vmem>>) attributes {dimension_semantics = [#tpu.dimension_semantics<parallel>], iteration_bounds = array<i64: 1>, scalar_prefetch = 0 : i64, scratch_operands = 0 : i64, tpu.core_type = #tpu.core_type<tc>, window_params = [{pipeline_mode = #tpu.pipeline_mode<synchronous>, transform_indices = @transform_0, window_bounds = array<i64: 1, 128>}, {pipeline_mode = #tpu.pipeline_mode<synchronous>, transform_indices = @transform_1, window_bounds = array<i64: 8, 128>}, {transform_indices = @transform_2, window_bounds = array<i64: 8, 128>}]} {
    %0 = arith.sitofp %arg0 : i32 to f32
    %c0 = arith.constant 0 : index
    %c0_0 = arith.constant 0 : index
    %1 = vector.load %arg2[%c0, %c0_0] : memref<8x128xf32, #tpu.memory_space<vmem>>, vector<8x128xf32>
    %c0_1 = arith.constant 0 : index
    %c0_2 = arith.constant 0 : index
    %2 = vector.load %arg1[%c0_1, %c0_2] : memref<1x128xf32, #tpu.memory_space<vmem>>, vector<1x128xf32>
    %3 = vector.broadcast %0 : f32 to vector<1x128xf32>
    %4 = arith.mulf %3, %2 : vector<1x128xf32>
    %5 = vector.broadcast %4 : vector<1x128xf32> to vector<8x128xf32>
    %6 = arith.addf %1, %5 : vector<8x128xf32>
    %7 = math.sin %6 : vector<8x128xf32>
    %c0_3 = arith.constant 0 : index
    %c0_4 = arith.constant 0 : index
    %8 = vector.load %arg3[%c0_3, %c0_4] : memref<8x128xf32, #tpu.memory_space<vmem>>, vector<8x128xf32>
    tpu.vector_store %arg3[%c0_3, %c0_4], %7 {strides = array<i32>} : memref<8x128xf32, #tpu.memory_space<vmem>>, vector<8x128xf32>,
    return
  }
  func.func @transform_0(%arg0: i32) -> (i32, i32) {
    %c0_i32 = arith.constant 0 : i32
    %c0_i32_0 = arith.constant 0 : i32
    %c0_i32_1 = arith.constant 0 : i32
    return %c0_i32, %c0_i32_0 : i32, i32
  }
  func.func @transform_1(%arg0: i32) -> (i32, i32) {
    %c0_i32 = arith.constant 0 : i32
    %c0_i32_0 = arith.constant 0 : i32
    %c0_i32_1 = arith.constant 0 : i32
    return %c0_i32, %c0_i32_0 : i32, i32
  }
  func.func @transform_2(%arg0: i32) -> (i32, i32) {
    %c0_i32 = arith.constant 0 : i32
    %c0_i32_0 = arith.constant 0 : i32
    return %arg0, %c0_i32 : i32, i32
  }
}

</mosaic_0001>

<bundles_post_ra>
// kernel: tpu_custom_call.1
= control target key start
LH: loop header
LB: loop body
LE: loop exit
PB: predicated region body
PF: predicated region fallthrough
CT: control target
= control target key end

     0   :  { %7 = vsyncpa [#allocation3], 0  ;;  %s394_s0 = inlined_call_operand.hbm [shape: f32[1,128], index: 0, kind: input, shape index: {}]   ;;  %s395_s1 = inlined_call_operand.hbm [shape: f32[8,128], index: 1, kind: input, shape index: {}]   ;;  %s396_s2 = inlined_call_operand.hbm [shape: f32[8,128], index: 2, kind: output, shape index: {}]  }
   0x1   :  { %8 = vsyncpa [#allocation6], 0 }
   0x2   :  { %9 = vsyncpa [#allocation4], 0  ;;  %s15_s11 = sshll.u32 %s394_s0, 4  ;;  %s314_s12 = smov [#allocation2]   ;;  %s16_s11 = int_to_ptr.hbm [resolvable:$true] %s15_s11 }
   0x3   :  { %s17_s13 = sshll.u32 %s314_s12, 4  ;;  %s26_s16 = sshll.u32 %s395_s1, 4  ;;  %s18_s13 = int_to_ptr.vmem [resolvable:$true] %s17_s13  ;;  %s27_s16 = int_to_ptr.hbm [resolvable:$true] %s26_s16 }
   0x4   :  { %20 = dma.hbm_to_vmem [thread:$0]  %s16_s11, 16, %s18_s13, [#allocation3]  }
   0x5   :  { %s315_s17 = smov [#allocation5]  }
   0x6   :  { %s28_s18 = sshll.u32 %s315_s17, 4  ;;  %s29_s18 = int_to_ptr.vmem [resolvable:$true] %s28_s18 }
   0x7   :  { %31 = dma.hbm_to_vmem [thread:$0]  %s27_s16, 128, %s29_s18, [#allocation6]  }
   0x8   :  { %308 = dma.done.wait [#allocation3], 16  }
   0x9   :  { %309 = vsyncadd [#allocation3], 4294967280 }
   0xa   :  { %310 = dma.done.wait [#allocation6], 128  }
   0xb   :  { %311 = vsyncadd [#allocation6], 4294967168  ;;  %v42_v0 = vld [vmem:[#allocation2] sm:$0x1]  ;;  %v41_v2 = vld [vmem:[#allocation5] sm:$0xff]  ;;  %s323_s0 = smov [#allocation7]  }
   0xc   :  { %v44_v1 = vmul.f32 0.0, %v42_v0  ;;  %v316_v16 = vmov 683565275   ;;  %v317_v18 = vmov 2475754826   ;;  %s210_s1 = sshll.u32 %s323_s0, 4  ;;  %s211_s1 = int_to_ptr.vmem [resolvable:$true] %s210_s1 }
   0xd   :  { %v318_v20 = vmov 2131351028   ;;  %v319_v22 = vmov 2102212464   ;;  %v320_v24 = vmov 920167782  }
   0xe   :  { %v46_v3 = vperm.slane %v44_v1, 0  ;;  %v321_v30 = vmov 1326507024   ;;  %s212_s21 = sshll.u32 %s396_s2, 4  ;;  %s213_s21 = int_to_ptr.hbm [resolvable:$true] %s212_s21 }
  0x10   :  { %v345_v4 = vadd.f32 %v46_v3, %v41_v2 }
  0x12   :  { %v52_v5 = vand.u32 2139095040, %v345_v4  ;;  %v49_v7 = vand.u32 2147483647, %v345_v4  ;;  %vm51_vm12 = vcmp.lt.s32.totalorder %v345_v4, 0 }
  0x14   :  { %v53_v6 = vshrl.u32 %v52_v5, 23  ;;  %v56_v10 = vand.u32 8388607, %v49_v7  ;;  %v322_v5 = vmov 0   ;;  %vm50_vm13 = vcmp.le.f32.partialorder %v49_v7, 0.7853982 }
  0x16   :  { %v223_v8 = vadd.s32 4294967169, %v53_v6  ;;  %v57_v13 = vor.u32 8388608, %v56_v10 }
  0x18   :  { %v59_v9 = vadd.s32 1, %v223_v8  ;;  %v354_v32 = vshll.u32 %v57_v13, 8 }
  0x1a   :  { %vm60_vm0 = vcmp.gt.s32.totalorder %v59_v9, 0  ;;  %v98_v44 = vand.u32 65535, %v354_v32  ;;  %v99_v45 = vshrl.u32 %v354_v32, 16 }
  0x1b   :  { %v61_v11 = vsel %vm60_vm0, %v59_v9, 0 }
  0x1c   :  { %v63_v12 = vand.u32 31, %v61_v11  ;;  %v351_v14 = vshrl.u32 %v61_v11, 5 }
  0x1e   :  { %v64_v15 = vsub.s32 32, %v63_v12  ;;  %v66_v17 = vshll.u32 %v316_v16, %v63_v12  ;;  %v69_v19 = vshll.u32 %v317_v18, %v63_v12  ;;  %v72_v21 = vshll.u32 %v318_v20, %v63_v12 }
  0x1f   :  { %v75_v23 = vshll.u32 %v319_v22, %v63_v12  ;;  %v78_v25 = vshll.u32 %v320_v24, %v63_v12  ;;  %vm81_vm1 = vcmp.lt.s32.totalorder %v351_v14, 1  ;;  %vm84_vm2 = vcmp.lt.s32.totalorder %v351_v14, 4 }
  0x20   :  { %v67_v26 = vshrl.u32 %v317_v18, %v64_v15  ;;  %v70_v27 = vshrl.u32 %v318_v20, %v64_v15  ;;  %v73_v28 = vshrl.u32 %v319_v22, %v64_v15  ;;  %v76_v29 = vshrl.u32 %v320_v24, %v64_v15 }
  0x21   :  { %v79_v31 = vshrl.u32 %v321_v30, %v64_v15  ;;  %vm83_vm3 = vcmp.lt.s32.totalorder %v351_v14, 3  ;;  %vm82_vm4 = vcmp.lt.s32.totalorder %v351_v14, 2  ;;  %v65_v52 = vshrl.u32 %v316_v16, %v64_v15 }
  0x22   :  { %v68_v33 = vor.u32 %v67_v26, %v66_v17  ;;  %v71_v34 = vor.u32 %v70_v27, %v69_v19  ;;  %v74_v35 = vor.u32 %v73_v28, %v72_v21  ;;  %v77_v36 = vor.u32 %v76_v29, %v75_v23 }
  0x23   :  { %v80_v37 = vor.u32 %v79_v31, %v78_v25 }
  0x24   :  { %v89_v38 = vsel %vm81_vm1, %v68_v33, %v71_v34  ;;  %v93_v39 = vsel %vm81_vm1, %v71_v34, %v74_v35  ;;  %v90_v40 = vsel %vm84_vm2, %v77_v36, 920167782  ;;  %v85_v1 = vsel %vm81_vm1, %v65_v52, %v68_v33 }
  0x25   :  { %v94_v41 = vsel %vm84_vm2, %v80_v37, 1326507024  ;;  %v91_v42 = vsel %vm83_vm3, %v74_v35, %v90_v40  ;;  %v86_v3 = vsel %vm84_vm2, %v74_v35, 2102212464  ;;  %vm192_vm1 = vweird.f32 %v345_v4 }
  0x26   :  { %v95_v43 = vsel %vm83_vm3, %v77_v36, %v94_v41  ;;  %v92_v46 = vsel %vm82_vm4, %v89_v38, %v91_v42  ;;  %v87_v16 = vsel %vm83_vm3, %v71_v34, %v86_v3 }
  0x27   :  { %v96_v47 = vsel %vm82_vm4, %v93_v39, %v95_v43  ;;  %v122_v50 = vand.u32 65535, %v92_v46  ;;  %v123_v51 = vshrl.u32 %v92_v46, 16  ;;  %v88_v24 = vsel %vm82_vm4, %v85_v1, %v87_v16 }
  0x28   :  { %v100_v48 = vand.u32 65535, %v96_v47  ;;  %v101_v49 = vshrl.u32 %v96_v47, 16  ;;  %v142_v28 = vmul.u32 %v354_v32, %v88_v24 }
  0x29   :  { %v124_v56 = vmul.u32 %v122_v50, %v98_v44  ;;  %v125_v57 = vmul.u32 %v123_v51, %v98_v44  ;;  %v126_v58 = vmul.u32 %v122_v50, %v99_v45  ;;  %v127_v62 = vmul.u32 %v123_v51, %v99_v45 }
  0x2a   :  { %v102_v53 = vmul.u32 %v100_v48, %v98_v44  ;;  %v103_v54 = vmul.u32 %v101_v49, %v98_v44  ;;  %v104_v55 = vmul.u32 %v100_v48, %v99_v45  ;;  %v105_v59 = vmul.u32 %v101_v49, %v99_v45 }
  0x2b   :  { %v128_v63 = vshll.u32 %v125_v57, 16  ;;  %v130_v0 = vshll.u32 %v126_v58, 16  ;;  %v129_v13 = vshrl.u32 %v125_v57, 16  ;;  %v131_v20 = vshrl.u32 %v126_v58, 16 }
  0x2c   :  { %v106_v60 = vshll.u32 %v103_v54, 16  ;;  %v108_v61 = vshll.u32 %v104_v55, 16  ;;  %v107_v9 = vshrl.u32 %v103_v54, 16  ;;  %v109_v17 = vshrl.u32 %v104_v55, 16 }
  0x2d   :  { %vm132_vm6 = vc.u32 %v124_v56, %v128_v63  ;;  %v134_v8 = vadd.s32 %v128_v63, %v124_v56 }
  0x2e   :  { %vm110_vm5 = vc.u32 %v102_v53, %v106_v60  ;;  %v112_v2 = vadd.s32 %v106_v60, %v102_v53  ;;  %v133_v11 = vsel %vm132_vm6, 1, %v322_v5 }
  0x2f   :  { %v111_v6 = vsel %vm110_vm5, 1, %v322_v5  ;;  %v135_v15 = vadd.s32 %v133_v11, %v127_v62  ;;  %vm136_vm8 = vc.u32 %v134_v8, %v130_v0  ;;  %v138_v23 = vadd.s32 %v134_v8, %v130_v0 }
  0x30   :  { %v113_v10 = vadd.s32 %v111_v6, %v105_v59  ;;  %vm114_vm7 = vc.u32 %v112_v2, %v108_v61  ;;  %v137_v19 = vsel %vm136_vm8, 1, %v322_v5 }
  0x31   :  { %v115_v12 = vsel %vm114_vm7, 1, %v322_v5  ;;  %v139_v21 = vadd.s32 %v137_v19, %v135_v15 }
  0x32   :  { %v117_v18 = vadd.s32 %v115_v12, %v113_v10 }
  0x33   :  { %v140_v25 = vadd.s32 %v139_v21, %v129_v13 }
  0x34   :  { %v118_v22 = vadd.s32 %v117_v18, %v107_v9 }
  0x35   :  { %v141_v27 = vadd.s32 %v140_v25, %v131_v20 }
  0x36   :  { %v119_v26 = vadd.s32 %v118_v22, %v109_v17 }
  0x37   :  { %v145_v29 = vadd.s32 1, %v141_v27 }
  0x38   :  { %vm144_vm9 = vc.u32 %v119_v26, %v138_v23  ;;  %v143_v14 = vadd.s32 %v138_v23, %v119_v26 }
  0x39   :  { %v146_v30 = vsel %vm144_vm9, %v145_v29, %v141_v27 }
  0x3a   :  { %v147_v31 = vadd.s32 %v146_v30, %v142_v28 }
  0x3c   :  { %v148_v33 = vadd.s32 536870912, %v147_v31 }
  0x3e   :  { %v149_v34 = vshrl.u32 %v148_v33, 30 }
  0x40   :  { %v150_v35 = vshll.u32 %v149_v34, 30  ;;  %v173_v52 = vsub.s32 4, %v149_v34 }
  0x42   :  { %v151_v36 = vsub.s32 %v147_v31, %v150_v35  ;;  %v174_v55 = vsel %vm51_vm12, %v173_v52, %v149_v34 }
  0x43   :  { %v176_v58 = vsel %vm50_vm13, 0, %v174_v55 }
  0x44   :  { %vm152_vm10 = vcmp.lt.s32.totalorder %v151_v36, 0  ;;  %v153_v37 = vsub.s32 0, %v151_v36  ;;  %v193_v63 = vadd.s32 3, %v176_v58 }
  0x46   :  { %v154_v38 = vsel %vm152_vm10, %v153_v37, %v151_v36  ;;  %v194_v5 = vand.u32 3, %v193_v63 }
  0x47   :  { %v155_v39 = vclz %v154_v38 }
  0x48   :  { %vm199_vm14 = vcmp.eq.s32.totalorder %v194_v5, 2  ;;  %vm196_vm15 = vcmp.eq.s32.totalorder %v194_v5, 0  ;;  %vm195_vm0 = vcmp.lt.s32.totalorder %v194_v5, 2 }
  0x49   :  { %v224_v40 = vadd.s32 4294967294, %v155_v39 }
  0x4b   :  { %vm225_vm11 = vcmp.lt.s32.totalorder %v224_v40, 0 }
  0x4c   :  { %v158_v41 = vsel %vm225_vm11, 0, %v224_v40 }
  0x4d   :  { %v159_v42 = vsub.s32 32, %v158_v41  ;;  %v160_v43 = vshll.u32 %v151_v36, %v158_v41  ;;  %v163_v44 = vsub.s32 4294967266, %v158_v41 }
  0x4f   :  { %v161_v32 = vshrl.u32 %v143_v14, %v159_v42  ;;  %v164_v45 = vadd.s32 127, %v163_v44 }
  0x51   :  { %v162_v46 = vor.u32 %v161_v32, %v160_v43  ;;  %v165_v47 = vshll.u32 %v164_v45, 23 }
  0x53   :  { %v166_v48 = vor.u32 4788187, %v165_v47  ;;  %v169_v49 = vcvt.s32.f32 %v162_v46 }
  0x55   :  { %v167_v50 = vand.u32 2147483647, %v166_v48 }
  0x57   :  { %v170_v51 = vmul.f32 %v169_v49, %v167_v50 }
  0x59   :  { %v171_v53 = vxor.u32 2147483648, %v170_v51 }
  0x5b   :  { %v172_v54 = vsel %vm51_vm12, %v171_v53, %v170_v51 }
  0x5c   :  { %v175_v56 = vsel %vm50_vm13, %v345_v4, %v172_v54 }
  0x5d   :  { %v177_v57 = vmul.f32 %v175_v56, %v175_v56 }
  0x5f   :  { %v178_v59 = vmul.f32 -0.001358992, %v177_v57  ;;  %v185_v60 = vmul.f32 -0.00019511016, %v177_v57 }
  0x61   :  { %v179_v61 = vadd.f32 0.041655596, %v178_v59  ;;  %v186_v62 = vadd.f32 0.008332121, %v185_v60 }
  0x63   :  { %v180_v0 = vmul.f32 %v179_v61, %v177_v57  ;;  %v187_v1 = vmul.f32 %v186_v62, %v177_v57 }
  0x65   :  { %v181_v2 = vadd.f32 -0.4999988, %v180_v0  ;;  %v188_v3 = vadd.f32 -0.16666654, %v187_v1 }
  0x67   :  { %v182_v6 = vmul.f32 %v181_v2, %v177_v57  ;;  %v189_v8 = vmul.f32 %v188_v3, %v177_v57 }
  0x69   :  { %v183_v7 = vadd.f32 1.0, %v182_v6  ;;  %v190_v9 = vadd.f32 1.0, %v189_v8 }
  0x6b   :  { %v191_v10 = vmul.f32 %v190_v9, %v175_v56  ;;  %v200_v11 = vxor.u32 2147483648, %v183_v7 }
  0x6d   :  { %v197_v12 = vxor.u32 2147483648, %v191_v10  ;;  %v201_v13 = vsel %vm199_vm14, %v200_v11, %v191_v10 }
  0x6f   :  { %v198_v15 = vsel %vm196_vm15, %v183_v7, %v197_v12 }
  0x70   :  { %v202_v16 = vsel %vm195_vm0, %v198_v15, %v201_v13 }
  0x71   :  { %v203_v17 = vsel %vm192_vm1, nan, %v202_v16 }
  0x72   :  { %204 = vst [vmem:[#allocation7] sm:$0xff] %v203_v17 }
  0x73   :  { %215 = dma.vmem_to_hbm [thread:$0]  %s211_s1, 128, %s213_s21, [#allocation4]  }
  0x74   :  { %312 = dma.done.wait [#allocation4], 128  }
  0x75   :  { %313 = vsyncadd [#allocation4], 4294967168 }
  0x76   :  { %220 = vsyncpa [#allocation3], 1 }
  0x77   :  { %221 = vsyncpa [#allocation6], 1 }
  0x78   :  { %222 = vsyncpa [#allocation4], 1 }

</bundles_post_ra>
